<compile_context>
chip_gen: v7x
topology: tpu7x:2x2x1
jax: 0.10.0
libtpu: 0.0.40
codegen_flags: <defaults>
</compile_context>

<pallas_src>
from typing import NamedTuple

import jax
import jax.numpy as jnp
from jax.experimental import pallas as pl
from jax.experimental.pallas import tpu as pltpu


def _round_up(x: int, m: int) -> int:
    return (x + m - 1) // m * m


def _cdiv(a: int, b: int) -> int:
    return (a + b - 1) // b


# --------------------------------------------------------------------------
# Parameter preparation (run once, outside the hot path).
# --------------------------------------------------------------------------
class FFNNParams(NamedTuple):
    w1: jax.Array          # (In_p, H_p)   compute dtype, zero-padded
    b1: jax.Array          # (1, H_p)      f32
    w2: jax.Array          # (H_p, Out_p)  compute dtype, zero-padded
    b2: jax.Array          # (1, Out_p)    f32
    in_features: int
    out_features: int


def prepare_params(w1, b1, w2, b2, *, compute_dtype=jnp.bfloat16) -> FFNNParams:
    """Pad feature dims to multiples of 128 and cast weights once."""
    In, H = w1.shape
    H2, Out = w2.shape
    assert H == H2 and b1.shape == (H,) and b2.shape == (Out,), "shape mismatch"
    In_p, H_p, Out_p = (_round_up(d, 128) for d in (In, H, Out))

    def pad2(a, rows, cols):
        if a.shape == (rows, cols):
            return a
        return jnp.pad(a, ((0, rows - a.shape[0]), (0, cols - a.shape[1])))

    return FFNNParams(
        w1=pad2(w1.astype(compute_dtype), In_p, H_p),
        b1=pad2(b1.astype(jnp.float32).reshape(1, H), 1, H_p),
        w2=pad2(w2.astype(compute_dtype), H_p, Out_p),
        b2=pad2(b2.astype(jnp.float32).reshape(1, Out), 1, Out_p),
        in_features=In,
        out_features=Out,
    )


# --------------------------------------------------------------------------
# Kernels.
# --------------------------------------------------------------------------
def _ffnn_kernel_resident(x_ref, w1_ref, b1_ref, w2_ref, b2_ref, o_ref):
    # In-kernel cast of x (hidden under the MXU; avoids an extra HBM pass).
    x = x_ref[...].astype(w1_ref.dtype)
    h = jnp.dot(x, w1_ref[...], preferred_element_type=jnp.float32)
    h = jnp.maximum(h + b1_ref[...], 0.0)                 # bias + ReLU in f32
    y = jnp.dot(h.astype(w2_ref.dtype), w2_ref[...],
                preferred_element_type=jnp.float32)
    o_ref[...] = (y + b2_ref[...]).astype(o_ref.dtype)


def _ffnn_kernel_out_tiled(x_ref, w1_ref, b1_ref, w2_ref, b2_ref, o_ref, h_ref):
    # Layer 1 runs once per batch tile (j == 0); the (TM, H_p) activation is
    # cached in VMEM scratch (compute dtype) and reused for every Out tile j.
    @pl.when(pl.program_id(1) == 0)
    def _():
        x = x_ref[...].astype(w1_ref.dtype)
        h = jnp.dot(x, w1_ref[...], preferred_element_type=jnp.float32)
        h = jnp.maximum(h + b1_ref[...], 0.0)
        h_ref[...] = h.astype(h_ref.dtype)

    y = jnp.dot(h_ref[...], w2_ref[...], preferred_element_type=jnp.float32)
    o_ref[...] = (y + b2_ref[...]).astype(o_ref.dtype)


# --------------------------------------------------------------------------
# BlockSpec helpers (single-buffer resident inputs; optional deeper x buffer).
# --------------------------------------------------------------------------
def _resident_spec(shape, index_map):
    # Constant index_map -> single buffer; double-buffering is pure VMEM waste.
    try:
        return pl.BlockSpec(shape, index_map, pipeline_mode=pl.Buffered(1))
    except (TypeError, AttributeError):      # older jax without pipeline_mode
        return pl.BlockSpec(shape, index_map)


def _stream_spec(shape, index_map, bufs):
    if bufs != 2:
        try:
            return pl.BlockSpec(shape, index_map, pipeline_mode=pl.Buffered(bufs))
        except (TypeError, AttributeError):
            pass
    return pl.BlockSpec(shape, index_map)


# --------------------------------------------------------------------------
# VMEM budgeting.
# --------------------------------------------------------------------------
_MIB = 1024 * 1024


def _vmem_capacity_bytes() -> int:
    try:
        cap = getattr(pltpu.get_tpu_info(), "vmem_capacity_bytes", None)
        if cap:
            return int(cap)
    except Exception:
        pass
    return 64 * _MIB          # conservative default (v7x per-core)


def _resident_vmem_bytes(tm, in_p, h_p, out_p, wsz, xsz, osz, x_bufs):
    weights = (in_p * h_p + h_p * out_p) * wsz + (h_p + out_p) * 4   # single-buffered
    stream = x_bufs * tm * in_p * xsz + 2 * tm * out_p * osz
    temps = tm * h_p * (4 + wsz) + tm * out_p * 4                    # h f32 + cast + y f32
    return weights + stream + temps


def _tiled_vmem_bytes(tm, tn, in_p, h_p, wsz, xsz, osz, x_bufs):
    resident = in_p * h_p * wsz + h_p * 4                            # W1 + b1
    stream = x_bufs * tm * in_p * xsz + 2 * (h_p * tn * wsz + tn * 4) + 2 * tm * tn * osz
    scratch = tm * h_p * wsz                                         # cached h
    temps = tm * h_p * 4 + tm * tn * 4
    return resident + stream + scratch + temps


# --------------------------------------------------------------------------
# Forward wrapper.
# --------------------------------------------------------------------------
def ffnn_forward(x, params: FFNNParams, *, block_m=512, block_n=512,
                 out_dtype=None, force_tiled=False, x_buffering=2):
    """x: (B, In) in any float dtype; params: see prepare_params."""
    B, In = x.shape
    assert In == params.in_features, "input feature mismatch"
    w1, b1, w2, b2 = params.w1, params.b1, params.w2, params.b2
    In_p, H_p = w1.shape
    _, Out_p = w2.shape
    Out = params.out_features

    compute_dtype = w1.dtype
    out_dtype = compute_dtype if out_dtype is None else out_dtype
    wsz = jnp.dtype(compute_dtype).itemsize
    xsz = jnp.dtype(x.dtype).itemsize
    osz = jnp.dtype(out_dtype).itemsize

    # Per-generation VMEM budget (v5e/v6e: 128 MiB -> ~112; v7x: 64 -> ~48).
    cap = _vmem_capacity_bytes()
    vmem_limit = min(112 * _MIB, max(32 * _MIB, cap - 16 * _MIB))
    budget = vmem_limit - 2 * _MIB

    # ---- batch tiling: TM multiple of 8, minimal padding, >= 2 tiles when
    #      there is enough batch so both v7x TensorCores get work. ----
    B8 = _round_up(B, 8)
    tm = max(8, min(_round_up(block_m, 8), B8))
    num_m = _cdiv(B8, tm)
    if B8 >= 16:
        num_m = max(num_m, 2)
    tm = _round_up(_cdiv(B8, num_m), 8)

    def resident_fits(t):
        return _resident_vmem_bytes(t, In_p, H_p, Out_p, wsz, xsz, osz,
                                    x_buffering) <= budget

    use_resident = not force_tiled
    if use_resident and not resident_fits(tm):
        t = tm
        while t > 8 and not resident_fits(t):
            t = _round_up(max(8, t // 2), 8)
        if resident_fits(t):
            tm = t
        else:
            use_resident = False

    compiler_params = dict(vmem_limit_bytes=vmem_limit)

    if use_resident:
        num_m = _cdiv(B8, tm)
        if B8 >= 16:
            num_m = max(num_m, 2)
        tm = _round_up(_cdiv(B8, num_m), 8)
        B_p = num_m * tm

        x_in = x if (B_p, In_p) == (B, In) else jnp.pad(
            x, ((0, B_p - B), (0, In_p - In)))

        out_padded = pl.pallas_call(
            _ffnn_kernel_resident,
            out_shape=jax.ShapeDtypeStruct((B_p, Out_p), out_dtype),
            grid_spec=pltpu.PrefetchScalarGridSpec(
                num_scalar_prefetch=0,
                grid=(num_m,),
                in_specs=[
                    _stream_spec((tm, In_p), lambda i: (i, 0), x_buffering),
                    _resident_spec((In_p, H_p), lambda i: (0, 0)),
                    _resident_spec((1, H_p), lambda i: (0, 0)),
                    _resident_spec((H_p, Out_p), lambda i: (0, 0)),
                    _resident_spec((1, Out_p), lambda i: (0, 0)),
                ],
                out_specs=pl.BlockSpec((tm, Out_p), lambda i: (i, 0)),
            ),
            compiler_params=pltpu.CompilerParams(
                dimension_semantics=("parallel",), **compiler_params),
        )(x_in, w1, b1, w2, b2)

        out = out_padded
        if (B_p, Out_p) != (B, Out):
            out = out[:B, :Out]
        return out

    # ---- Out-tiled fallback: W2 / b2 / output streamed per (i, j);
    #      layer-1 activation cached in VMEM and reused across j. ----
    tn = max(128, min(_round_up(block_n, 128), Out_p))

    def tiled_fits(t_m, t_n):
        return _tiled_vmem_bytes(t_m, t_n, In_p, H_p, wsz, xsz, osz,
                                 x_buffering) <= budget

    while tn > 128 and not tiled_fits(tm, tn):
        tn = _round_up(max(128, tn // 2), 128)
    while tm > 8 and not tiled_fits(tm, tn):
        tm = _round_up(max(8, tm // 2), 8)
    # TODO(synk): K-tiled reduction over In_p (f32 accumulator + pl.when
    # init/finalize) for W1 that exceeds the VMEM budget even at (8, 128).

    num_m = _cdiv(B8, tm)
    if B8 >= 16:
        num_m = max(num_m, 2)
    tm = _round_up(_cdiv(B8, num_m), 8)
    B_p = num_m * tm

    num_n = _cdiv(Out_p, tn)
    Out_pp = num_n * tn
    if Out_pp != Out_p:
        w2 = jnp.pad(w2, ((0, 0), (0, Out_pp - Out_p)))
        b2 = jnp.pad(b2, ((0, 0), (0, Out_pp - Out_p)))

    x_in = x if (B_p, In_p) == (B, In) else jnp.pad(
        x, ((0, B_p - B), (0, In_p - In)))

    out_padded = pl.pallas_call(
        _ffnn_kernel_out_tiled,
        out_shape=jax.ShapeDtypeStruct((B_p, Out_pp), out_dtype),
        grid_spec=pltpu.PrefetchScalarGridSpec(
            num_scalar_prefetch=0,
            grid=(num_m, num_n),
            in_specs=[
                _stream_spec((tm, In_p), lambda i, j: (i, 0), x_buffering),
                _resident_spec((In_p, H_p), lambda i, j: (0, 0)),
                _resident_spec((1, H_p), lambda i, j: (0, 0)),
                pl.BlockSpec((H_p, tn), lambda i, j: (0, j)),
                pl.BlockSpec((1, tn), lambda i, j: (0, j)),
            ],
            out_specs=pl.BlockSpec((tm, tn), lambda i, j: (i, j)),
            scratch_shapes=[pltpu.VMEM((tm, H_p), compute_dtype)],
        ),
        compiler_params=pltpu.CompilerParams(
            dimension_semantics=("parallel", "arbitrary"), **compiler_params),
    )(x_in, w1, b1, w2, b2)

    out = out_padded
    if (B_p, Out_pp) != (B, Out):
        out = out[:B, :Out]
    return out


# --------------------------------------------------------------------------
# Init + pure-JAX reference.
# --------------------------------------------------------------------------
def init_ffnn_params(key, input_size, hidden_size, output_size,
                     dtype=jnp.float32):
    """nn.Linear-style init; weights returned pre-transposed to (in, out)."""
    k1, k2, k3, k4 = jax.random.split(key, 4)
    bound1 = 1.0 / jnp.sqrt(input_size)
    bound2 = 1.0 / jnp.sqrt(hidden_size)
    w1_t = jax.random.uniform(k1, (hidden_size, input_size),
                              minval=-bound1, maxval=bound1, dtype=dtype)
    b1 = jax.random.uniform(k2, (hidden_size,),
                            minval=-bound1, maxval=bound1, dtype=dtype)
    w2_t = jax.random.uniform(k3, (output_size, hidden_size),
                              minval=-bound2, maxval=bound2, dtype=dtype)
    b2 = jax.random.uniform(k4, (output_size,),
                            minval=-bound2, maxval=bound2, dtype=dtype)
    return w1_t.T, b1, w2_t.T, b2


def ffnn_reference(x, w1, b1, w2, b2, compute_dtype=jnp.float32):
    xc = x.astype(compute_dtype)
    h = jnp.dot(xc, w1.astype(compute_dtype),
                preferred_element_type=jnp.float32)
    h = jnp.maximum(h + b1.astype(jnp.float32), 0.0)
    y = jnp.dot(h.astype(compute_dtype), w2.astype(compute_dtype),
                preferred_element_type=jnp.float32)
    return y + b2.astype(jnp.float32)


if __name__ == "__main__":
    key = jax.random.PRNGKey(0)
    batch, input_size, hidden_size, output_size = 24, 16, 32, 8

    kx, kp = jax.random.split(key)
    x = jax.random.normal(kx, (batch, input_size), dtype=jnp.float32)
    w1, b1, w2, b2 = init_ffnn_params(kp, input_size, hidden_size, output_size)
    ref_f32 = ffnn_reference(x, w1, b1, w2, b2, compute_dtype=jnp.float32)

    # --- f32 compute path (resident weights, >= 2 batch tiles): exact math ---
    p_f32 = prepare_params(w1, b1, w2, b2, compute_dtype=jnp.float32)
    out_f32 = jax.block_until_ready(ffnn_forward(x, p_f32))
    assert out_f32.shape == (batch, output_size)
    assert jnp.allclose(out_f32, ref_f32, atol=1e-4, rtol=1e-4)

    # --- bf16 compute path (default fast MXU path), bf16 output ---
    p_bf16 = prepare_params(w1, b1, w2, b2, compute_dtype=jnp.bfloat16)
    out_bf16 = jax.block_until_ready(ffnn_forward(x, p_bf16))
    ref_bf16 = ffnn_reference(x, w1, b1, w2, b2, compute_dtype=jnp.bfloat16)
    assert out_bf16.shape == (batch, output_size)
    assert out_bf16.dtype == jnp.bfloat16
    o32 = out_bf16.astype(jnp.float32)
    assert jnp.allclose(o32, ref_bf16, atol=3e-2, rtol=3e-2)
    assert jnp.allclose(o32, ref_f32, atol=1.5e-1, rtol=1.5e-1)

    # --- Out-tiled fallback path (forced): exercises the (M, N) grid, the
    #     pl.when(j == 0) layer-1 compute, and the VMEM h-scratch reuse ---
    out_wide = 256
    w1b, b1b, w2b, b2b = init_ffnn_params(jax.random.PRNGKey(1),
                                          input_size, hidden_size, out_wide)
    p_wide = prepare_params(w1b, b1b, w2b, b2b, compute_dtype=jnp.float32)
    out_tiled = jax.block_until_ready(
        ffnn_forward(x, p_wide, force_tiled=True, block_m=16, block_n=128))
    ref_wide = ffnn_reference(x, w1b, b1b, w2b, b2b, compute_dtype=jnp.float32)
    assert out_tiled.shape == (batch, out_wide)
    assert jnp.allclose(out_tiled, ref_wide, atol=1e-4, rtol=1e-4)

    print("KERNEL_OK")
</pallas_src>

<mosaic_0001>
module attributes {stable_mosaic.version = 11 : i64} {
  func.func @_ffnn_kernel_resident(%arg0: i32, %arg1: memref<16x128xf32, #tpu.memory_space<vmem>>, %arg2: memref<128x128xf32, #tpu.memory_space<vmem>>, %arg3: memref<1x128xf32, #tpu.memory_space<vmem>>, %arg4: memref<128x128xf32, #tpu.memory_space<vmem>>, %arg5: memref<1x128xf32, #tpu.memory_space<vmem>>, %arg6: memref<16x128xf32, #tpu.memory_space<vmem>>) attributes {dimension_semantics = [#tpu.dimension_semantics<parallel>], iteration_bounds = array<i64: 2>, scalar_prefetch = 0 : i64, scratch_operands = 0 : i64, tpu.core_type = #tpu.core_type<tc>, window_params = [{transform_indices = @transform_0, window_bounds = array<i64: 16, 128>}, {pipeline_mode = #tpu.pipeline_mode<synchronous>, transform_indices = @transform_1, window_bounds = array<i64: 128, 128>}, {pipeline_mode = #tpu.pipeline_mode<synchronous>, transform_indices = @transform_2, window_bounds = array<i64: 1, 128>}, {pipeline_mode = #tpu.pipeline_mode<synchronous>, transform_indices = @transform_3, window_bounds = array<i64: 128, 128>}, {pipeline_mode = #tpu.pipeline_mode<synchronous>, transform_indices = @transform_4, window_bounds = array<i64: 1, 128>}, {transform_indices = @transform_5, window_bounds = array<i64: 16, 128>}]} {
    %c0 = arith.constant 0 : index
    %c0_0 = arith.constant 0 : index
    %0 = vector.load %arg1[%c0, %c0_0] : memref<16x128xf32, #tpu.memory_space<vmem>>, vector<16x128xf32>
    %c0_1 = arith.constant 0 : index
    %c0_2 = arith.constant 0 : index
    %1 = vector.load %arg2[%c0_1, %c0_2] : memref<128x128xf32, #tpu.memory_space<vmem>>, vector<128x128xf32>
    %cst = arith.constant dense<0.000000e+00> : vector<16x128xf32>
    %2 = tpu.matmul %0, %1, %cst {dimension_numbers = #tpu.dot_dimension_numbers<[1], [0], [0], [1], [0, 0, 1, 1], [], []>} : vector<16x128xf32>, vector<128x128xf32>, vector<16x128xf32> -> vector<16x128xf32>
    %c0_3 = arith.constant 0 : index
    %c0_4 = arith.constant 0 : index
    %3 = vector.load %arg3[%c0_3, %c0_4] : memref<1x128xf32, #tpu.memory_space<vmem>>, vector<1x128xf32>
    %4 = vector.broadcast %3 : vector<1x128xf32> to vector<16x128xf32>
    %5 = arith.addf %2, %4 : vector<16x128xf32>
    %cst_5 = arith.constant 0.000000e+00 : f32
    %6 = vector.broadcast %cst_5 : f32 to vector<16x128xf32>
    %7 = arith.maximumf %5, %6 : vector<16x128xf32>
    %c0_6 = arith.constant 0 : index
    %c0_7 = arith.constant 0 : index
    %8 = vector.load %arg4[%c0_6, %c0_7] : memref<128x128xf32, #tpu.memory_space<vmem>>, vector<128x128xf32>
    %cst_8 = arith.constant dense<0.000000e+00> : vector<16x128xf32>
    %9 = tpu.matmul %7, %8, %cst_8 {dimension_numbers = #tpu.dot_dimension_numbers<[1], [0], [0], [1], [0, 0, 1, 1], [], []>} : vector<16x128xf32>, vector<128x128xf32>, vector<16x128xf32> -> vector<16x128xf32>
    %c0_9 = arith.constant 0 : index
    %c0_10 = arith.constant 0 : index
    %10 = vector.load %arg5[%c0_9, %c0_10] : memref<1x128xf32, #tpu.memory_space<vmem>>, vector<1x128xf32>
    %11 = vector.broadcast %10 : vector<1x128xf32> to vector<16x128xf32>
    %12 = arith.addf %9, %11 : vector<16x128xf32>
    %c0_11 = arith.constant 0 : index
    %c0_12 = arith.constant 0 : index
    %13 = vector.load %arg6[%c0_11, %c0_12] : memref<16x128xf32, #tpu.memory_space<vmem>>, vector<16x128xf32>
    tpu.vector_store %arg6[%c0_11, %c0_12], %12 {strides = array<i32>} : memref<16x128xf32, #tpu.memory_space<vmem>>, vector<16x128xf32>,
    return
  }
  func.func @transform_0(%arg0: i32) -> (i32, i32) {
    %c0_i32 = arith.constant 0 : i32
    %c0_i32_0 = arith.constant 0 : i32
    return %arg0, %c0_i32 : i32, i32
  }
  func.func @transform_1(%arg0: i32) -> (i32, i32) {
    %c0_i32 = arith.constant 0 : i32
    %c0_i32_0 = arith.constant 0 : i32
    %c0_i32_1 = arith.constant 0 : i32
    return %c0_i32, %c0_i32_0 : i32, i32
  }
  func.func @transform_2(%arg0: i32) -> (i32, i32) {
    %c0_i32 = arith.constant 0 : i32
    %c0_i32_0 = arith.constant 0 : i32
    %c0_i32_1 = arith.constant 0 : i32
    return %c0_i32, %c0_i32_0 : i32, i32
  }
  func.func @transform_3(%arg0: i32) -> (i32, i32) {
    %c0_i32 = arith.constant 0 : i32
    %c0_i32_0 = arith.constant 0 : i32
    %c0_i32_1 = arith.constant 0 : i32
    return %c0_i32, %c0_i32_0 : i32, i32
  }
  func.func @transform_4(%arg0: i32) -> (i32, i32) {
    %c0_i32 = arith.constant 0 : i32
    %c0_i32_0 = arith.constant 0 : i32
    %c0_i32_1 = arith.constant 0 : i32
    return %c0_i32, %c0_i32_0 : i32, i32
  }
  func.func @transform_5(%arg0: i32) -> (i32, i32) {
    %c0_i32 = arith.constant 0 : i32
    %c0_i32_0 = arith.constant 0 : i32
    return %arg0, %c0_i32 : i32, i32
  }
}

</mosaic_0001>

<bundles_post_ra>
// kernel: tpu_custom_call.1
= control target key start
LH: loop header
LB: loop body
LE: loop exit
PB: predicated region body
PF: predicated region fallthrough
CT: control target
= control target key end

     0   :  { %10 = vsyncpa [#allocation3], 0  ;;  %s1298_s0 = inlined_call_operand.hbm [shape: f32[32,128], index: 0, kind: input, shape index: {}]   ;;  %s1299_s1 = inlined_call_operand.hbm [shape: f32[128,128], index: 1, kind: input, shape index: {}]   ;;  %s1300_s2 = inlined_call_operand.vmem [shape: f32[1,128], index: 2, kind: input, shape index: {}]   ;;  %s1301_s3 = inlined_call_operand.hbm [shape: f32[128,128], index: 3, kind: input, shape index: {}]   ;;  %s1302_s4 = inlined_call_operand.vmem [shape: f32[1,128], index: 4, kind: input, shape index: {}]   ;;  %s1303_s5 = inlined_call_operand.hbm [shape: f32[32,128], index: 5, kind: output, shape index: {}]  }
   0x1   :  { %12 = vsyncpa [#allocation3 + $0x1], 0 }
   0x2   :  { %13 = vsyncpa [#allocation6], 0 }
   0x3   :  { %14 = vsyncpa [#allocation4], 0 }
   0x4   :  { %16 = vsyncpa [#allocation4 + $0x1], 0  ;;  %s1041_s18 = smov 0   ;;  %s1043_s19 = smov 0  }
   0x5   :  { %s1045_s20 = smov 0   ;;  %s1047_s21 = smov 0  }
   0x6 LB: > { %s1062_s22 = sadd.s32 4294967295, %s1001_s21   ;;  %s582_s23 = sadd.s32 4294967294, %s1001_s21   ;;  %s1001_s21 = sphi %s1047_s21, %s1323_s21   ;;  %s997_s20 = sphi %s1045_s20, %s1322_s20   ;;  %s993_s19 = sphi %s1043_s19, %s1321_s19   ;;  %s989_s18 = sphi %s1041_s18, %s1320_s18  }
   0x7   : > { %p42_p0 = scmp.ne.s32.totalorder %s993_s19, %s989_s18  ;;  %p1304_p1 = scmp.eq.s32.totalorder %s1062_s22, 0 }
   0x8   : > { %p156_p3 = scmp.eq.s32.totalorder %s582_s23, 1  ;;  %p583_p5 = scmp.ge.s32.totalorder %s1001_s21, 1 }
   0x9   : > { %p1071_p4 = por %p1304_p1, %p42_p0  ;;  %p163_p7 = scmp.lt.s32.totalorder %s1001_s21, 3 }
   0xa   : > { %p1076_p6 = por %p156_p3, %p42_p0  ;;  %s1003_s27 = smov [#allocation5]  }
   0xb   : > { %s1307_s24 = scalar_select %p1071_p4, 1, 0 }
   0xc   : > { %s1308_s25 = scalar_select %p1076_p6, 1, 0 }
   0xd   : > { %p1081_p8 = pnand %p583_p5, %p163_p7  ;;  %s175_s28 = sshll.u32 %s1003_s27, 4  ;;  %s1085_s28 = int_to_ptr.vmem [resolvable:$true] %s175_s28 }
   0xe   : > { %s1004_s30 = smov [#allocation7]   ;;  %s845_s9 = scalar_lea.hbm %s1299_s1, 2048 }
   0xf   : > { %p786_p9 = pneg %p1081_p8  ;;  %s191_s6 = sshll.u32 %s1004_s30, 4  ;;  %s1096_s6 = int_to_ptr.vmem [resolvable:$true] %s191_s6 }
  0x10   : > { %p846_p12 = scmp.ne.s32.totalorder %s1299_s1, %s845_s9  ;;  %p852_p5 = scmp.lt.u32.totalorder %s845_s9, %s1299_s1 }
  0x11   : > { %p1092_p11 = pnand %p786_p9, %p1304_p1 }
  0x13   : > { %p847_p13 = pneg %p1092_p11 }
  0x15   : > { %p848_p0 = pnand %p847_p13, %p846_p12 }
  0x17   : > { %p849_p3 = pneg %p848_p0 }
  0x19   : > { %p854_p7 = pnand %p852_p5, %p849_p3 }
  0x1b   : > { %857 = shalt.err (!%p854_p7)
}
  0x1c   : > { %s858_s14 = scalar_lea.vmem %s1085_s28, 2048  ;;  %p866_p2 = scmp.lt.s32.totalorder %s1085_s28, %s1085_s28 }
  0x1d   : > { %p859_p9 = scmp.ne.s32.totalorder %s1085_s28, %s858_s14  ;;  %p867_p12 = scmp.lt.s32.totalorder %s858_s14, %s858_s14 }
  0x1f   : > { %p861_p10 = pnand %p859_p9, %p847_p13  ;;  %p868_p0 = por %p867_p12, %p866_p2 }
  0x21   : > { %p862_p1 = pneg %p861_p10 }
  0x23   : > { %p869_p6 = pnand %p868_p0, %p862_p1 }
  0x25   : > { %872 = shalt.err (!%p869_p6)
}
  0x26   : > { %s1005_s15 = smov 128   ;;  %s1006_s16 = smov 8  }
  0x27   : > { %789 = dma.hbm_to_vmem [thread:$0]  (!%p1092_p11), %s1299_s1, 2048, %s1085_s28, [#allocation6], %s1005_s15, %s1005_s15, %s1006_s16  }
  0x28   : > { %s873_s7 = scalar_lea.hbm %s1301_s3, 2048 }
  0x29   : > { %p874_p1 = scmp.ne.s32.totalorder %s1301_s3, %s873_s7  ;;  %p880_p10 = scmp.lt.u32.totalorder %s873_s7, %s1301_s3 }
  0x2b   : > { %p876_p2 = pnand %p874_p1, %p847_p13 }
  0x2d   : > { %p877_p6 = pneg %p876_p2 }
  0x2f   : > { %p882_p3 = pnand %p880_p10, %p877_p6 }
  0x31   : > { %885 = shalt.err (!%p882_p3)
}
  0x32   : > { %s886_s28 = scalar_lea.vmem %s1096_s6, 2048  ;;  %p894_p12 = scmp.lt.s32.totalorder %s1096_s6, %s1096_s6 }
  0x33   : > { %p887_p5 = scmp.ne.s32.totalorder %s1096_s6, %s886_s28  ;;  %p895_p0 = scmp.lt.s32.totalorder %s886_s28, %s886_s28 }
  0x35   : > { %p889_p7 = pnand %p887_p5, %p847_p13  ;;  %p896_p1 = por %p895_p0, %p894_p12 }
  0x37   : > { %p890_p9 = pneg %p889_p7 }
  0x39   : > { %p897_p2 = pnand %p896_p1, %p890_p9 }
  0x3b   : > { %900 = shalt.err (!%p897_p2)
}
  0x3c   : > { %792 = dma.hbm_to_vmem [thread:$0]  (!%p1092_p11), %s1301_s3, 2048, %s1096_s6, [#allocation6], %s1005_s15, %s1005_s15, %s1006_s16  }
  0x3d   : > { %s1157_s29 = sadd.s32 1, %s1001_s21   ;;  %s29_s14 = sadd.s32 1, %s997_s20 }
  0x3e   : > { %s26_s17 = ssub.s32 %s1001_s21, %s1157_s29  ;;  %p36_p13 = scmp.ne.s32.totalorder %s997_s20, %s993_s19 }
  0x3f   : > { %p27_p6 = scmp.eq.s32.totalorder %s26_s17, 0  ;;  %p37_p10 = scmp.eq.s32.totalorder %s1001_s21, 0 }
  0x40   : > { %p1311_p3 = scmp.eq.s32.totalorder %s1062_s22, 1  ;;  %p803_p7 = scmp.lt.s32.totalorder %s1001_s21, 2 }
  0x41   : > { %s1173_s27 = scalar_select %p27_p6, %s997_s20, %s29_s14  }
  0x42   : > { %p1167_p5 = por %p1311_p3, %p36_p13  ;;  %p38_p9 = por %p37_p10, %p36_p13 }
  0x43   : > { %s208_s30 = sand.u32 1, %s997_s20   ;;  %s602_s6 = sshll.u32 %s1001_s21, 8 }
  0x44   : > { %s1312_s23 = scalar_select %p1167_p5, 1, 0 }
  0x45   : > { %s587_s7 = sshll.u32 %s208_s30, 4  ;;  %s1180_s10 = scalar_lea.hbm %s1298_s0, %s602_s6 }
  0x46   : > { %s212_s11 = scalar_lea.vmem [#allocation2], %s587_s7  ;;  %p1184_p11 = pnand %p803_p7, %p38_p9 }
  0x47   : > { %s219_s28 = sshll.u32 %s212_s11, 4  ;;  %s1188_s13 = scalar_lea.sflag [#allocation3], %s208_s30  ;;  %s1182_s28 = int_to_ptr.vmem [resolvable:$true] %s219_s28 }
  0x48   : > { %s901_s14 = scalar_lea.hbm %s1180_s10, 256  ;;  %p903_p0 = pneg %p1184_p11 }
  0x49   : > { %p902_p12 = scmp.ne.s32.totalorder %s1180_s10, %s901_s14  ;;  %s906_s6 = scalar_lea.hbm %s1298_s0, 512 }
  0x4a   : > { %p907_p13 = scmp.lt.u32.totalorder %s1180_s10, %s1298_s0  ;;  %p908_p6 = scmp.lt.u32.totalorder %s906_s6, %s901_s14 }
  0x4b   : > { %p904_p1 = pnand %p903_p0, %p902_p12  ;;  %p910_p3 = scmp.lt.u32.totalorder %s901_s14, %s1180_s10 }
  0x4c   : > { %p909_p10 = por %p908_p6, %p907_p13 }
  0x4d   : > { %p905_p2 = pneg %p904_p1 }
  0x4e   : > { %p911_p7 = por %p910_p3, %p909_p10 }
  0x50   : > { %p912_p9 = pnand %p911_p7, %p905_p2 }
  0x52   : > { %915 = shalt.err (!%p912_p9)
}
  0x53   : > { %s916_s30 = scalar_lea.vmem %s1182_s28, 256  ;;  %s1007_s11 = smov [#allocation2]  }
  0x54   : > { %p917_p12 = scmp.ne.s32.totalorder %s1182_s28, %s916_s30  ;;  %s921_s17 = sshll.u32 %s1007_s11, 4  ;;  %s922_s17 = int_to_ptr.vmem [resolvable:$false] %s921_s17 }
  0x55   : > { %s923_s7 = scalar_lea.vmem %s922_s17, 512  ;;  %p924_p4 = scmp.lt.s32.totalorder %s1182_s28, %s922_s17 }
  0x56   : > { %p919_p1 = pnand %p917_p12, %p903_p0  ;;  %p925_p13 = scmp.lt.s32.totalorder %s923_s7, %s916_s30 }
  0x58   : > { %p920_p5 = pneg %p919_p1  ;;  %p926_p6 = por %p925_p13, %p924_p4 }
  0x5a   : > { %p927_p10 = pnand %p926_p6, %p920_p5 }
  0x5c   : > { %930 = shalt.err (!%p927_p10)
}
  0x5d   : > { %796 = dma.hbm_to_vmem [thread:$0]  (!%p1184_p11), %s1180_s10, 256, %s1182_s28, %s1188_s13, %s1005_s15, %s1005_s15, %s1006_s16  }
  0x5e   : > { %231 = sbr.rel (%p1081_p8) target bundleno = 588 (0x24c), region = 40  ;;  %s1222_s14 = sand.u32 (!%p1081_p8), 1, %s993_s19  }
  0x5f   : > { %s591_s6 = sshll.u32 (!%p1081_p8), %s1222_s14, 4  ;;  %s234_s8 = scalar_lea.sflag (!%p1081_p8), [#allocation3], %s1222_s14 }
  0x60   : > { %s1228_s12 = scalar_lea.vmem (!%p1081_p8), [#allocation2], %s591_s6  ;;  %p1314_p4 = scmp.ne.s32.totalorder (!%p1081_p8), %s1307_s24, 0 }
  0x65   : > { %976 = dma.done.wait (%p1314_p4), %s234_s8, 256  }
  0x66   : > { %978 = vsyncadd (%p1314_p4), %s234_s8, 4294967040  ;;  %p1315_p5 = scmp.eq.s32.totalorder %s1062_s22, 0 }
  0x68   : > { %980 = dma.done.wait (%p1315_p5), [#allocation6], 4096   ;;  %p1316_p8 = pmov %p1315_p5 }
  0x69   : > { %v276_v0 = vld [vmem:[#allocation5] sm:$0xff]  ;;  %v277_v1 = vld [vmem:[#allocation5 + $0x8] sm:$0xff]  ;;  %v278_v2 = vld [vmem:[#allocation5 + $0x10] sm:$0xff]  ;;  %s271_s15 = scalar_lea.vmem [#allocation8], %s591_s6  ;;  %s603_s13 = sshll.u32 %s1062_s22, 8 }
  0x6a   : > { %982 = vsyncadd (%p1316_p8), [#allocation6], 4294963200  ;;  %v710_v3 = vpack.c.bf16 %v277_v1, %v276_v0  ;;  %v279_v4 = vld [vmem:[#allocation5 + $0x18] sm:$0xff]  ;;  %v280_v6 = vld [vmem:[#allocation5 + $0x20] sm:$0xff]  ;;  %s490_s16 = sshll.u32 %s271_s15, 4  ;;  %s1254_s11 = scalar_lea.hbm %s1303_s5, %s603_s13  ;;  %s1249_s16 = int_to_ptr.vmem [resolvable:$true] %s490_s16 }
  0x6b   : > { %v714_v5 = vpack.c.bf16 %v279_v4, %v278_v2  ;;  %v281_v7 = vld [vmem:[#allocation5 + $0x28] sm:$0xff]  ;;  %v282_v9 = vld [vmem:[#allocation5 + $0x30] sm:$0xff]  ;;  %v283_v10 = vld [vmem:[#allocation5 + $0x38] sm:$0xff]  ;;  %s477_s17 = scalar_lea.sflag [#allocation4], %s1222_s14  ;;  %s931_s7 = scalar_lea.vmem %s1249_s16, 256 }
  0x6c   : > { %711 = vmatprep.subr.bf16.mxu0 %v710_v3  ;;  %v718_v8 = vpack.c.bf16 %v281_v7, %v280_v6  ;;  %v274_v11 = vld [vmem:[%s1228_s12] sm:$0xff]  ;;  %v377_v13 = vld [vmem:[#allocation7 + $0x8] sm:$0xff]  ;;  %v379_v16 = vld [vmem:[#allocation7 + $0x18] sm:$0xff]  ;;  %v722_v20 = vpack.c.bf16 %v283_v10, %v282_v9  ;;  %p932_p11 = scmp.ne.s32.totalorder %s1249_s16, %s931_s7  ;;  %p1317_p0 = scmp.ne.s32.totalorder %s1312_s23, 0 }
  0x6d   : > { %713 = vmatpush3.bf16.msra.mxu0 %v710_v3  ;;  %672 = vmatprep.mubr.f32.mxu0 %v274_v11  ;;  %v376_v12 = vld [vmem:[#allocation7] sm:$0xff]  ;;  %v378_v14 = vld [vmem:[#allocation7 + $0x10] sm:$0xff]  ;;  %v381_v19 = vld [vmem:[#allocation7 + $0x28] sm:$0xff]  ;;  %s1008_s22 = smov [#allocation8]  }
  0x6e   : > { %715 = vmatprep.subr.bf16.mxu0 %v714_v5  ;;  %v742_v15 = vpack.c.bf16 %v377_v13, %v376_v12  ;;  %v746_v17 = vpack.c.bf16 %v379_v16, %v378_v14  ;;  %v380_v18 = vld [vmem:[#allocation7 + $0x20] sm:$0xff]  ;;  %v285_v22 = vld [vmem:[#allocation5 + $0x48] sm:$0xff]  ;;  %v382_v24 = vld [vmem:[#allocation7 + $0x30] sm:$0xff]  ;;  %p933_p2 = pnand %p932_p11, %p1317_p0  ;;  %s935_s6 = sshll.u32 %s1008_s22, 4  ;;  %s936_s6 = int_to_ptr.vmem [resolvable:$false] %s935_s6 }
  0x6f   : > { %v284_v21 = vld [vmem:[#allocation5 + $0x40] sm:$0xff]  ;;  %v750_v23 = vpack.c.bf16 %v381_v19, %v380_v18  ;;  %v383_v25 = vld [vmem:[#allocation7 + $0x38] sm:$0xff]  ;;  %v286_v27 = vld [vmem:[#allocation5 + $0x50] sm:$0xff]  ;;  %s937_s8 = scalar_lea.vmem %s936_s6, 512  ;;  %p938_p7 = scmp.lt.s32.totalorder %s1249_s16, %s936_s6 }
  0x70   : > { %743 = vmatprep.subr.bf16.mxu1 %v742_v15  ;;  %v726_v26 = vpack.c.bf16 %v285_v22, %v284_v21  ;;  %v287_v28 = vld [vmem:[#allocation5 + $0x58] sm:$0xff]  ;;  %v754_v29 = vpack.c.bf16 %v383_v25, %v382_v24  ;;  %v384_v30 = vld [vmem:[#allocation7 + $0x40] sm:$0xff]  ;;  %v385_v31 = vld [vmem:[#allocation7 + $0x48] sm:$0xff]  ;;  %p934_p3 = pneg %p933_p2  ;;  %p939_p9 = scmp.lt.s32.totalorder %s937_s8, %s931_s7 }
  0x71   : > { %717 = vmatpush3.bf16.msra.mxu0 %v714_v5  ;;  %745 = vmatpush3.bf16.msra.mxu1 %v742_v15  ;;  %v730_v32 = vpack.c.bf16 %v287_v28, %v286_v27  ;;  %v288_v33 = vld [vmem:[#allocation5 + $0x60] sm:$0xff]  ;;  %v289_v34 = vld [vmem:[#allocation5 + $0x68] sm:$0xff]  ;;  %v758_v35 = vpack.c.bf16 %v385_v31, %v384_v30  ;;  %v386_v36 = vld [vmem:[#allocation7 + $0x50] sm:$0xff] }
  0x72   : > { %719 = vmatprep.subr.bf16.mxu0 %v718_v8  ;;  %747 = vmatprep.subr.bf16.mxu1 %v746_v17  ;;  %v387_v37 = vld [vmem:[#allocation7 + $0x58] sm:$0xff]  ;;  %v734_v38 = vpack.c.bf16 %v289_v34, %v288_v33  ;;  %v290_v39 = vld [vmem:[#allocation5 + $0x70] sm:$0xff]  ;;  %v388_v42 = vld [vmem:[#allocation7 + $0x60] sm:$0xff]  ;;  %p940_p12 = por %p939_p9, %p938_p7 }
  0x73   : > { %v291_v40 = vld [vmem:[#allocation5 + $0x78] sm:$0xff]  ;;  %v762_v41 = vpack.c.bf16 %v387_v37, %v386_v36  ;;  %v389_v43 = vld [vmem:[#allocation7 + $0x68] sm:$0xff]  ;;  %v390_v47 = vld [vmem:[#allocation7 + $0x70] sm:$0xff] }
  0x74   : > { %v738_v44 = vpack.c.bf16 %v291_v40, %v290_v39  ;;  %v766_v45 = vpack.c.bf16 %v389_v43, %v388_v42  ;;  %v275_v46 = vld [vmem:[%s1228_s12 + $0x8] sm:$0xff]  ;;  %v595_v50 = vld [vmem:[%s1300_s2] ss:$0 sm:$0xff]  ;;  %p941_p1 = pnand %p940_p12, %p934_p3 }
  0x75   : > { %721 = vmatpush3.bf16.msra.mxu0 %v718_v8  ;;  %749 = vmatpush3.bf16.msra.mxu1 %v746_v17  ;;  %v391_v48 = vld [vmem:[#allocation7 + $0x78] sm:$0xff]  ;;  %v596_v57 = vld [vmem:[%s1302_s4] ss:$0 sm:$0xff] }
  0x76   : > { %723 = vmatprep.subr.bf16.mxu0 %v722_v20  ;;  %751 = vmatprep.subr.bf16.mxu1 %v750_v23  ;;  %v770_v49 = vpack.c.bf16 %v391_v48, %v390_v47 }
  0x79   : > { %725 = vmatpush3.bf16.msra.mxu0 %v722_v20  ;;  %753 = vmatpush3.bf16.msra.mxu1 %v750_v23 }
  0x7a   : > { %727 = vmatprep.subr.bf16.mxu0 %v726_v26  ;;  %755 = vmatprep.subr.bf16.mxu1 %v754_v29 }
  0x7d   : > { %729 = vmatpush3.bf16.msra.mxu0 %v726_v26  ;;  %757 = vmatpush3.bf16.msra.mxu1 %v754_v29 }
  0x7e   : > { %731 = vmatprep.subr.bf16.mxu0 %v730_v32  ;;  %759 = vmatprep.subr.bf16.mxu1 %v758_v35 }
  0x81   : > { %733 = vmatpush3.bf16.msra.mxu0 %v730_v32  ;;  %761 = vmatpush3.bf16.msra.mxu1 %v758_v35 }
  0x82   : > { %735 = vmatprep.subr.bf16.mxu0 %v734_v38  ;;  %763 = vmatprep.subr.bf16.mxu1 %v762_v41 }
  0x85   : > { %737 = vmatpush3.bf16.msra.mxu0 %v734_v38  ;;  %765 = vmatpush3.bf16.msra.mxu1 %v762_v41 }
  0x86   : > { %739 = vmatprep.subr.bf16.mxu0 %v738_v44  ;;  %767 = vmatprep.subr.bf16.mxu1 %v766_v45 }
  0x89   : > { %741 = vmatpush3.bf16.msra.mxu0 %v738_v44  ;;  %769 = vmatpush3.bf16.msra.mxu1 %v766_v45 }
  0x8a   : > { %771 = vmatprep.subr.bf16.mxu1 %v770_v49 }
  0x8c   : > { %673 = vmatmul.mubr.f32.vlgmr.msra.gmra.mrb[0].mxu0 %v275_v46 }
  0x8d   : > { %773 = vmatpush3.bf16.msra.mxu1 %v770_v49 }
 0x15f   : > { %v674_v51 = vpop.f32.mrb[0].mxu0 }
 0x160   : > { %v371_v52 = vadd.f32 %v674_v51, %v595_v50  ;;  %v365_v53 = vpop.f32.mrb[1].mxu0 }
 0x161   : > { %v366_v54 = vadd.f32 %v595_v50, %v365_v53 }
 0x162   : > { %v375_v56 = vmax.f32 %v371_v52, 0.0 }
 0x163   : > { %v374_v55 = vmax.f32 %v366_v54, 0.0 }
 0x165   : > { %707 = vmatprep.mubr.f32.mxu1 %v374_v55 }
 0x166   : > { %708 = vmatmul.mubr.f32.vlgmr.msra.gmra.mrb[0].mxu1 %v375_v56 }
 0x239   : > { %v709_v58 = vpop.f32.mrb[0].mxu1 }
 0x23a   : > { %v471_v59 = vadd.f32 %v709_v58, %v596_v57  ;;  %v465_v60 = vpop.f32.mrb[1].mxu1 }
 0x23b   : > { %v466_v61 = vadd.f32 %v596_v57, %v465_v60 }
 0x23c   : > { %475 = vst [vmem:[%s271_s15 + $0x8] sm:$0xff] %v471_v59 }
 0x23d   : > { %474 = vst [vmem:[%s271_s15] sm:$0xff] %v466_v61 }
 0x23e   : > { %944 = shalt.err (!%p941_p1)
}
 0x23f   : > { %s945_s12 = scalar_lea.hbm %s1254_s11, 256  ;;  %s949_s15 = scalar_lea.hbm %s1303_s5, 512 }
 0x240   : > { %p946_p13 = scmp.ne.s32.totalorder %s1254_s11, %s945_s12  ;;  %p950_p4 = scmp.lt.u32.totalorder %s1254_s11, %s1303_s5 }
 0x241   : > { %p951_p5 = scmp.lt.u32.totalorder %s949_s15, %s945_s12  ;;  %p953_p11 = scmp.lt.u32.totalorder %s945_s12, %s1254_s11 }
 0x242   : > { %p947_p6 = pnand %p946_p13, %p1317_p0 }
 0x243   : > { %p952_p8 = por %p951_p5, %p950_p4 }
 0x244   : > { %p948_p10 = pneg %p947_p6 }
 0x245   : > { %p954_p2 = por %p953_p11, %p952_p8 }
 0x247   : > { %p955_p3 = pnand %p954_p2, %p948_p10 }
 0x249   : > { %958 = shalt.err (!%p955_p3)
}
 0x24a   : > { %s1009_s13 = smov 128   ;;  %s1010_s9 = smov 8  }
 0x24b   : > { %784 = dma.vmem_to_hbm [thread:$0]  (%p1317_p0), %s1249_s16, 256, %s1254_s11, %s477_s17, %s1009_s13, %s1009_s13, %s1010_s9  }
 0x24c PF: > { %s505_s30 = sand.u32 1, %s989_s18   ;;  %p1318_p7 = scmp.ne.s32.totalorder %s1308_s25, 0 }
 0x24d   : > { %p1319_p9 = scmp.ge.s32.totalorder %s1001_s21, 2  ;;  %s506_s7 = scalar_lea.sflag [#allocation4], %s505_s30 }
 0x24f   : > { %p798_p12 = pnand %p1319_p9, %p1318_p7 }
 0x251   : > { %984 = dma.done.wait (!%p798_p12), %s506_s7, 256  }
 0x252   : > { %986 = vsyncadd (!%p798_p12), %s506_s7, 4294967040  ;;  %p19_p1 = scmp.ge.s32.totalorder %s1157_s29, 4   ;;  %s1320_s18 = smov %s993_s19 }
 0x253   : > { %s1321_s19 = smov %s997_s20  ;;  %s1322_s20 = smov %s1173_s27 }
 0x254   : > { %s1323_s21 = smov %s1157_s29  ;;  %21 = sbr.rel (!%p19_p1) target bundleno = 6 (0x6), region = 93 }
 0x25b   :  { %511 = vsyncpa [#allocation3], 1 }
 0x25c   :  { %513 = vsyncpa [#allocation3 + $0x1], 1 }
 0x25d   :  { %514 = vsyncpa [#allocation6], 1 }
 0x25e   :  { %515 = vsyncpa [#allocation4], 1 }
 0x25f   :  { %517 = vsyncpa [#allocation4 + $0x1], 1 }

</bundles_post_ra>
